<compile_context>
chip_gen: v7x
topology: tpu7x:2x2x1
jax: 0.10.0
libtpu: 0.0.40
codegen_flags: <defaults>
</compile_context>

<pallas_src>
import functools
import math

import jax
import jax.numpy as jnp
from jax.experimental import pallas as pl
from jax.experimental.pallas import tpu as pltpu

LANES = 128
SUBLANES = 8
CORE_SPLIT = 2                       # leading "parallel" grid axis (v7x megacore)
MAX_BLOCK_BYTES = 2 * 1024 * 1024    # per input per block (f32 -> 4096 rows)


def _round_up(x, m):
    return ((x + m - 1) // m) * m


def _cdiv(a, b):
    return -(-a // b)


def _fpow(x, p):
    """x ** p.  Integer exponents become explicit multiplies (VPU, no EUP)."""
    p = float(p)
    if p.is_integer() and 0.0 <= p <= 16.0:
        ip = int(p)
        if ip == 0:
            return jnp.ones_like(x)
        result = None
        base = x
        while ip:
            if ip & 1:
                result = base if result is None else result * base
            ip >>= 1
            if ip:
                base = base * base
        return result
    return jnp.power(x, p)


def _focal_kernel(pred_ref, gt_ref, acc_ref, *,
                  alpha, beta, epsilon, apply_sigmoid):
    """Accumulates (pos_loss, neg_loss, n_pos, n_neg) into the resident
    (1, 4, 8, 128) output block of the current core."""
    j = pl.program_id(1)          # reduction ("arbitrary") axis

    @pl.when(j == 0)
    def _init():
        acc_ref[...] = jnp.zeros_like(acc_ref)

    # Cast after the (possibly bf16) load; for f32 inputs this is a no-op.
    pred = pred_ref[...].astype(jnp.float32)
    gt = gt_ref[...].astype(jnp.float32)

    pos_inds = gt == 1.0
    neg_inds = gt < 1.0          # sentinel-padded lanes have gt=2.0 -> neither

    if apply_sigmoid:
        pred = jax.nn.sigmoid(pred)

    neg_weights = _fpow(1.0 - gt, beta)
    pred = jnp.clip(pred, epsilon, 1.0 - epsilon)

    pos_loss = jnp.where(pos_inds, jnp.log(pred) * _fpow(1.0 - pred, alpha), 0.0)
    neg_loss = jnp.where(
        neg_inds, jnp.log(1.0 - pred) * _fpow(pred, alpha) * neg_weights, 0.0)

    def fold(x):
        # (block_rows, 128) -> (8, 128): pure VPU adds across vregs.
        return x.reshape(-1, SUBLANES, LANES).sum(axis=0)

    acc_ref[0, 0] += fold(pos_loss)
    acc_ref[0, 1] += fold(neg_loss)
    acc_ref[0, 2] += fold(pos_inds.astype(jnp.float32))
    acc_ref[0, 3] += fold(neg_inds.astype(jnp.float32))


def heatmap_focal_loss(pred, gt, *, alpha=2.0, beta=4.0, epsilon=1e-6,
                       apply_sigmoid=False):
    assert pred.shape == gt.shape
    n = int(math.prod(pred.shape)) if pred.shape else 1

    itemsize = jnp.dtype(pred.dtype).itemsize
    # Sub-32-bit dtypes pack rows along sublanes: respect the min tile.
    sub_mult = {4: 8, 2: 16, 1: 32}.get(itemsize, 8)
    max_block_rows = max(
        sub_mult, (MAX_BLOCK_BYTES // (LANES * itemsize)) // sub_mult * sub_mult)

    rows_raw = _cdiv(n, LANES)
    blocks_per_core = max(1, _cdiv(rows_raw, CORE_SPLIT * max_block_rows))
    block_rows = _round_up(_cdiv(rows_raw, CORE_SPLIT * blocks_per_core), sub_mult)
    rows = CORE_SPLIT * blocks_per_core * block_rows
    n_padded = rows * LANES

    # Lane-dense (rows, 128) slab.  Pad with sentinels so no in-kernel mask is
    # needed: gt=2.0 -> not positive, not negative -> contributes exactly zero.
    pred_flat = jnp.ravel(pred)
    gt_flat = jnp.ravel(gt)
    if n_padded != n:
        pad = n_padded - n
        pred_flat = jnp.pad(pred_flat, (0, pad), constant_values=0.5)
        gt_flat = jnp.pad(gt_flat, (0, pad), constant_values=2.0)
    pred2d = pred_flat.reshape(rows, LANES)
    gt2d = gt_flat.reshape(rows, LANES)

    kernel = functools.partial(
        _focal_kernel, alpha=float(alpha), beta=float(beta),
        epsilon=float(epsilon), apply_sigmoid=bool(apply_sigmoid))

    in_map = lambda c, j: (c * blocks_per_core + j, 0)

    partials = pl.pallas_call(
        kernel,
        out_shape=jax.ShapeDtypeStruct(
            (CORE_SPLIT, 4, SUBLANES, LANES), jnp.float32),
        grid_spec=pltpu.PrefetchScalarGridSpec(
            num_scalar_prefetch=0,
            grid=(CORE_SPLIT, blocks_per_core),
            in_specs=[
                pl.BlockSpec((block_rows, LANES), in_map),
                pl.BlockSpec((block_rows, LANES), in_map),
            ],
            # Per-core resident accumulator block (constant over the j axis).
            out_specs=pl.BlockSpec((1, 4, SUBLANES, LANES),
                                   lambda c, j: (c, 0, 0, 0)),
        ),
        compiler_params=pltpu.CompilerParams(
            dimension_semantics=("parallel", "arbitrary"),
            # 2 inputs x 2 pipeline buffers x <=2 MiB blocks plus outputs;
            # raise the limit explicitly so v5e's smaller default is not an
            # issue and larger blocks stay safe.
            vmem_limit_bytes=32 * 1024 * 1024),
    )(pred2d, gt2d)

    # Tiny finalize in XLA: sum the per-core / per-lane partials and divide.
    sums = jnp.sum(partials, axis=(0, 2, 3))          # (4,)
    pos_loss = sums[0] / (sums[2] + epsilon)
    neg_loss = sums[1] / (sums[3] + epsilon)
    return -(pos_loss + neg_loss)


def heatmap_focal_loss_ref(pred, gt, *, alpha=2.0, beta=4.0, epsilon=1e-6,
                           apply_sigmoid=False):
    pred = pred.astype(jnp.float32)
    gt = gt.astype(jnp.float32)
    pos_inds = (gt == 1.0).astype(jnp.float32)
    neg_inds = (gt < 1.0).astype(jnp.float32)
    if apply_sigmoid:
        pred = jax.nn.sigmoid(pred)
    neg_weights = jnp.power(1.0 - gt, beta)
    pred = jnp.clip(pred, epsilon, 1.0 - epsilon)
    pos_loss = jnp.log(pred) * jnp.power(1.0 - pred, alpha) * pos_inds
    neg_loss = jnp.log(1.0 - pred) * jnp.power(pred, alpha) * neg_weights * neg_inds
    pos_loss = jnp.sum(pos_loss) / (jnp.sum(pos_inds) + epsilon)
    neg_loss = jnp.sum(neg_loss) / (jnp.sum(neg_inds) + epsilon)
    return -(pos_loss + neg_loss)


if __name__ == "__main__":
    key = jax.random.PRNGKey(0)
    k1, k2, k3 = jax.random.split(key, 3)

    B, C, H, W = 2, 4, 16, 16  # NCHW, same as the PyTorch module's inputs

    # Predictions already in (0, 1) (apply_sigmoid=False path).
    pred = jax.random.uniform(k1, (B, C, H, W), jnp.float32,
                              minval=0.01, maxval=0.99)
    # Gaussian-like heatmap ground truth in [0, 1], with some exact 1s.
    gt = jax.random.uniform(k2, (B, C, H, W), jnp.float32)
    gt = jnp.where(jax.random.uniform(k3, (B, C, H, W)) > 0.95, 1.0, gt * 0.9)

    loss = jax.block_until_ready(heatmap_focal_loss(pred, gt))
    ref = heatmap_focal_loss_ref(pred, gt)
    assert jnp.allclose(loss, ref, rtol=1e-5, atol=1e-5), (loss, ref)

    # Ragged / sentinel-padded path with a non-aligned element count.
    shp = (2, 3, 15, 17)  # 1530 elements -> wrapper sentinel pad
    kp, kg, km = jax.random.split(jax.random.PRNGKey(1), 3)
    pred2 = jax.random.uniform(kp, shp, jnp.float32, minval=0.01, maxval=0.99)
    gt2 = jax.random.uniform(kg, shp, jnp.float32)
    gt2 = jnp.where(jax.random.uniform(km, shp) > 0.95, 1.0, gt2 * 0.9)
    loss2 = jax.block_until_ready(heatmap_focal_loss(pred2, gt2))
    ref2 = heatmap_focal_loss_ref(pred2, gt2)
    assert jnp.allclose(loss2, ref2, rtol=1e-5, atol=1e-5), (loss2, ref2)

    # bf16 inputs (no wrapper upcast -> half the HBM bytes) + sigmoid path.
    kl, kh, kn = jax.random.split(jax.random.PRNGKey(2), 3)
    logits = jax.random.uniform(kl, (B, C, H, W), jnp.float32,
                                minval=-2.0, maxval=2.0).astype(jnp.bfloat16)
    gt3 = jax.random.uniform(kh, (B, C, H, W), jnp.float32)
    gt3 = jnp.where(jax.random.uniform(kn, (B, C, H, W)) > 0.95, 1.0, gt3 * 0.9)
    gt3 = gt3.astype(jnp.bfloat16)
    loss3 = jax.block_until_ready(
        heatmap_focal_loss(logits, gt3, apply_sigmoid=True))
    ref3 = heatmap_focal_loss_ref(logits, gt3, apply_sigmoid=True)
    assert jnp.allclose(loss3, ref3, rtol=1e-4, atol=1e-4), (loss3, ref3)

    print("KERNEL_OK")
</pallas_src>

<mosaic_0001>
module attributes {stable_mosaic.version = 11 : i64} {
  func.func @_focal_kernel(%arg0: i32, %arg1: i32, %arg2: memref<8x128xf32, #tpu.memory_space<vmem>>, %arg3: memref<8x128xf32, #tpu.memory_space<vmem>>, %arg4: memref<1x4x8x128xf32, #tpu.memory_space<vmem>>) attributes {dimension_semantics = [#tpu.dimension_semantics<parallel>, #tpu.dimension_semantics<arbitrary>], iteration_bounds = array<i64: 2, 1>, scalar_prefetch = 0 : i64, scratch_operands = 0 : i64, tpu.core_type = #tpu.core_type<tc>, window_params = [{transform_indices = @transform_0, window_bounds = array<i64: 8, 128>}, {transform_indices = @transform_1, window_bounds = array<i64: 8, 128>}, {transform_indices = @transform_2, window_bounds = array<i64: 1, 4, 8, 128>}]} {
    %c0_i32 = arith.constant 0 : i32
    %0 = arith.cmpi eq, %arg1, %c0_i32 : i32
    %1 = arith.extui %0 : i1 to i32
    %c0_i32_0 = arith.constant 0 : i32
    %2 = arith.cmpi ne, %1, %c0_i32_0 : i32
    scf.if %2 {
      %cst_45 = arith.constant 0.000000e+00 : f32
      %68 = vector.broadcast %cst_45 : f32 to vector<1x4x8x128xf32>
      %c0_46 = arith.constant 0 : index
      %c0_47 = arith.constant 0 : index
      %c0_48 = arith.constant 0 : index
      %c0_49 = arith.constant 0 : index
      %69 = vector.load %arg4[%c0_46, %c0_47, %c0_48, %c0_49] : memref<1x4x8x128xf32, #tpu.memory_space<vmem>>, vector<1x4x8x128xf32>
      tpu.vector_store %arg4[%c0_46, %c0_47, %c0_48, %c0_49], %68 {strides = array<i32>} : memref<1x4x8x128xf32, #tpu.memory_space<vmem>>, vector<1x4x8x128xf32>,
    } else {
    }
    %c0 = arith.constant 0 : index
    %c0_1 = arith.constant 0 : index
    %3 = vector.load %arg2[%c0, %c0_1] : memref<8x128xf32, #tpu.memory_space<vmem>>, vector<8x128xf32>
    %c0_2 = arith.constant 0 : index
    %c0_3 = arith.constant 0 : index
    %4 = vector.load %arg3[%c0_2, %c0_3] : memref<8x128xf32, #tpu.memory_space<vmem>>, vector<8x128xf32>
    %cst = arith.constant 1.000000e+00 : f32
    %5 = vector.broadcast %cst : f32 to vector<8x128xf32>
    %6 = arith.cmpf oeq, %4, %5 : vector<8x128xf32>
    %cst_4 = arith.constant 1.000000e+00 : f32
    %7 = vector.broadcast %cst_4 : f32 to vector<8x128xf32>
    %8 = arith.cmpf olt, %4, %7 : vector<8x128xf32>
    %cst_5 = arith.constant 1.000000e+00 : f32
    %9 = vector.broadcast %cst_5 : f32 to vector<8x128xf32>
    %10 = arith.subf %9, %4 : vector<8x128xf32>
    %11 = arith.mulf %10, %10 : vector<8x128xf32>
    %12 = arith.mulf %11, %11 : vector<8x128xf32>
    %cst_6 = arith.constant 9.99999997E-7 : f32
    %cst_7 = arith.constant 0.999998986 : f32
    %13 = vector.broadcast %cst_6 : f32 to vector<8x128xf32>
    %14 = arith.maximumf %13, %3 : vector<8x128xf32>
    %15 = vector.broadcast %cst_7 : f32 to vector<8x128xf32>
    %16 = arith.minimumf %15, %14 : vector<8x128xf32>
    %17 = math.log %16 : vector<8x128xf32>
    %cst_8 = arith.constant 1.000000e+00 : f32
    %18 = vector.broadcast %cst_8 : f32 to vector<8x128xf32>
    %19 = arith.subf %18, %16 : vector<8x128xf32>
    %20 = arith.mulf %19, %19 : vector<8x128xf32>
    %21 = arith.mulf %17, %20 : vector<8x128xf32>
    %cst_9 = arith.constant 0.000000e+00 : f32
    %22 = vector.broadcast %cst_9 : f32 to vector<8x128xf32>
    %23 = arith.select %6, %21, %22 : vector<8x128xi1>, vector<8x128xf32>
    %cst_10 = arith.constant 1.000000e+00 : f32
    %24 = vector.broadcast %cst_10 : f32 to vector<8x128xf32>
    %25 = arith.subf %24, %16 : vector<8x128xf32>
    %26 = math.log %25 : vector<8x128xf32>
    %27 = arith.mulf %16, %16 : vector<8x128xf32>
    %28 = arith.mulf %26, %27 : vector<8x128xf32>
    %29 = arith.mulf %28, %12 : vector<8x128xf32>
    %cst_11 = arith.constant 0.000000e+00 : f32
    %30 = vector.broadcast %cst_11 : f32 to vector<8x128xf32>
    %31 = arith.select %8, %29, %30 : vector<8x128xi1>, vector<8x128xf32>
    %c0_12 = arith.constant 0 : index
    %c0_13 = arith.constant 0 : index
    %c0_14 = arith.constant 0 : index
    %c0_15 = arith.constant 0 : index
    %32 = vector.load %arg4[%c0_12, %c0_13, %c0_14, %c0_15] : memref<1x4x8x128xf32, #tpu.memory_space<vmem>>, vector<1x1x8x128xf32>
    %33 = vector.shape_cast %32 : vector<1x1x8x128xf32> to vector<8x128xf32>
    %34 = vector.shape_cast %23 : vector<8x128xf32> to vector<1x8x128xf32>
    %cst_16 = arith.constant dense<0.000000e+00> : vector<8x128xf32>
    %35 = vector.multi_reduction <add>, %34, %cst_16 [0] : vector<1x8x128xf32> to vector<8x128xf32>
    %36 = arith.addf %33, %35 : vector<8x128xf32>
    %c0_17 = arith.constant 0 : index
    %c0_18 = arith.constant 0 : index
    %c0_19 = arith.constant 0 : index
    %c0_20 = arith.constant 0 : index
    %37 = vector.load %arg4[%c0_17, %c0_18, %c0_19, %c0_20] : memref<1x4x8x128xf32, #tpu.memory_space<vmem>>, vector<1x1x8x128xf32>
    %38 = vector.shape_cast %37 : vector<1x1x8x128xf32> to vector<8x128xf32>
    %39 = vector.shape_cast %36 : vector<8x128xf32> to vector<1x1x8x128xf32>
    tpu.vector_store %arg4[%c0_17, %c0_18, %c0_19, %c0_20], %39 {strides = array<i32>} : memref<1x4x8x128xf32, #tpu.memory_space<vmem>>, vector<1x1x8x128xf32>,
    %c0_21 = arith.constant 0 : index
    %c1 = arith.constant 1 : index
    %c0_22 = arith.constant 0 : index
    %c0_23 = arith.constant 0 : index
    %40 = vector.load %arg4[%c0_21, %c1, %c0_22, %c0_23] : memref<1x4x8x128xf32, #tpu.memory_space<vmem>>, vector<1x1x8x128xf32>
    %41 = vector.shape_cast %40 : vector<1x1x8x128xf32> to vector<8x128xf32>
    %42 = vector.shape_cast %31 : vector<8x128xf32> to vector<1x8x128xf32>
    %cst_24 = arith.constant dense<0.000000e+00> : vector<8x128xf32>
    %43 = vector.multi_reduction <add>, %42, %cst_24 [0] : vector<1x8x128xf32> to vector<8x128xf32>
    %44 = arith.addf %41, %43 : vector<8x128xf32>
    %c0_25 = arith.constant 0 : index
    %c1_26 = arith.constant 1 : index
    %c0_27 = arith.constant 0 : index
    %c0_28 = arith.constant 0 : index
    %45 = vector.load %arg4[%c0_25, %c1_26, %c0_27, %c0_28] : memref<1x4x8x128xf32, #tpu.memory_space<vmem>>, vector<1x1x8x128xf32>
    %46 = vector.shape_cast %45 : vector<1x1x8x128xf32> to vector<8x128xf32>
    %47 = vector.shape_cast %44 : vector<8x128xf32> to vector<1x1x8x128xf32>
    tpu.vector_store %arg4[%c0_25, %c1_26, %c0_27, %c0_28], %47 {strides = array<i32>} : memref<1x4x8x128xf32, #tpu.memory_space<vmem>>, vector<1x1x8x128xf32>,
    %c0_29 = arith.constant 0 : index
    %c2 = arith.constant 2 : index
    %c0_30 = arith.constant 0 : index
    %c0_31 = arith.constant 0 : index
    %48 = vector.load %arg4[%c0_29, %c2, %c0_30, %c0_31] : memref<1x4x8x128xf32, #tpu.memory_space<vmem>>, vector<1x1x8x128xf32>
    %49 = vector.shape_cast %48 : vector<1x1x8x128xf32> to vector<8x128xf32>
    %50 = arith.extui %6 : vector<8x128xi1> to vector<8x128xi32>
    %51 = arith.sitofp %50 : vector<8x128xi32> to vector<8x128xf32>
    %52 = vector.shape_cast %51 : vector<8x128xf32> to vector<1x8x128xf32>
    %cst_32 = arith.constant dense<0.000000e+00> : vector<8x128xf32>
    %53 = vector.multi_reduction <add>, %52, %cst_32 [0] : vector<1x8x128xf32> to vector<8x128xf32>
    %54 = arith.addf %49, %53 : vector<8x128xf32>
    %c0_33 = arith.constant 0 : index
    %c2_34 = arith.constant 2 : index
    %c0_35 = arith.constant 0 : index
    %c0_36 = arith.constant 0 : index
    %55 = vector.load %arg4[%c0_33, %c2_34, %c0_35, %c0_36] : memref<1x4x8x128xf32, #tpu.memory_space<vmem>>, vector<1x1x8x128xf32>
    %56 = vector.shape_cast %55 : vector<1x1x8x128xf32> to vector<8x128xf32>
    %57 = vector.shape_cast %54 : vector<8x128xf32> to vector<1x1x8x128xf32>
    tpu.vector_store %arg4[%c0_33, %c2_34, %c0_35, %c0_36], %57 {strides = array<i32>} : memref<1x4x8x128xf32, #tpu.memory_space<vmem>>, vector<1x1x8x128xf32>,
    %c0_37 = arith.constant 0 : index
    %c3 = arith.constant 3 : index
    %c0_38 = arith.constant 0 : index
    %c0_39 = arith.constant 0 : index
    %58 = vector.load %arg4[%c0_37, %c3, %c0_38, %c0_39] : memref<1x4x8x128xf32, #tpu.memory_space<vmem>>, vector<1x1x8x128xf32>
    %59 = vector.shape_cast %58 : vector<1x1x8x128xf32> to vector<8x128xf32>
    %60 = arith.extui %8 : vector<8x128xi1> to vector<8x128xi32>
    %61 = arith.sitofp %60 : vector<8x128xi32> to vector<8x128xf32>
    %62 = vector.shape_cast %61 : vector<8x128xf32> to vector<1x8x128xf32>
    %cst_40 = arith.constant dense<0.000000e+00> : vector<8x128xf32>
    %63 = vector.multi_reduction <add>, %62, %cst_40 [0] : vector<1x8x128xf32> to vector<8x128xf32>
    %64 = arith.addf %59, %63 : vector<8x128xf32>
    %c0_41 = arith.constant 0 : index
    %c3_42 = arith.constant 3 : index
    %c0_43 = arith.constant 0 : index
    %c0_44 = arith.constant 0 : index
    %65 = vector.load %arg4[%c0_41, %c3_42, %c0_43, %c0_44] : memref<1x4x8x128xf32, #tpu.memory_space<vmem>>, vector<1x1x8x128xf32>
    %66 = vector.shape_cast %65 : vector<1x1x8x128xf32> to vector<8x128xf32>
    %67 = vector.shape_cast %64 : vector<8x128xf32> to vector<1x1x8x128xf32>
    tpu.vector_store %arg4[%c0_41, %c3_42, %c0_43, %c0_44], %67 {strides = array<i32>} : memref<1x4x8x128xf32, #tpu.memory_space<vmem>>, vector<1x1x8x128xf32>,
    return
  }
  func.func @transform_0(%arg0: i32, %arg1: i32) -> (i32, i32) {
    %c1_i32 = arith.constant 1 : i32
    %0 = arith.muli %arg0, %c1_i32 : i32
    %1 = arith.addi %0, %arg1 : i32
    %c0_i32 = arith.constant 0 : i32
    %c0_i32_0 = arith.constant 0 : i32
    return %1, %c0_i32 : i32, i32
  }
  func.func @transform_1(%arg0: i32, %arg1: i32) -> (i32, i32) {
    %c1_i32 = arith.constant 1 : i32
    %0 = arith.muli %arg0, %c1_i32 : i32
    %1 = arith.addi %0, %arg1 : i32
    %c0_i32 = arith.constant 0 : i32
    %c0_i32_0 = arith.constant 0 : i32
    return %1, %c0_i32 : i32, i32
  }
  func.func @transform_2(%arg0: i32, %arg1: i32) -> (i32, i32, i32, i32) {
    %c0_i32 = arith.constant 0 : i32
    %c0_i32_0 = arith.constant 0 : i32
    %c0_i32_1 = arith.constant 0 : i32
    %c0_i32_2 = arith.constant 0 : i32
    return %arg0, %c0_i32, %c0_i32_0, %c0_i32_1 : i32, i32, i32, i32
  }
}

</mosaic_0001>

<bundles_post_ra>
// kernel: tpu_custom_call.1
= control target key start
LH: loop header
LB: loop body
LE: loop exit
PB: predicated region body
PF: predicated region fallthrough
CT: control target
= control target key end

     0   :  { %7 = vsyncpa [#allocation3], 0  ;;  %s884_s0 = inlined_call_operand.hbm [shape: f32[16,128], index: 0, kind: input, shape index: {}]   ;;  %s885_s1 = inlined_call_operand.hbm [shape: f32[16,128], index: 1, kind: input, shape index: {}]   ;;  %s886_s2 = inlined_call_operand.hbm [shape: f32[2,4,8,128], index: 2, kind: output, shape index: {}]  }
   0x1   :  { %9 = vsyncpa [#allocation3 + $0x1], 0 }
   0x2   :  { %10 = vsyncpa [#allocation6], 0 }
   0x3   :  { %12 = vsyncpa [#allocation6 + $0x1], 0 }
   0x4   :  { %13 = vsyncpa [#allocation4], 0 }
   0x5   :  { %15 = vsyncpa [#allocation4 + $0x1], 0  ;;  %s657_s9 = smov 0   ;;  %s659_s10 = smov 0  }
   0x6   :  { %s661_s11 = smov 0   ;;  %s663_s12 = smov 0  }
   0x7   :  { %s665_s13 = smov 0   ;;  %s667_s14 = smov 0  }
   0x8 LB: > { %s388_s15 = sadd.s32 4294967295, %s634_s14   ;;  %s389_s16 = sadd.s32 4294967294, %s634_s14   ;;  %s634_s14 = sphi %s667_s14, %s21_s14   ;;  %s630_s13 = sphi %s665_s13, %s906_s13   ;;  %s626_s12 = sphi %s663_s12, %s905_s12   ;;  %s622_s11 = sphi %s661_s11, %s904_s11   ;;  %s618_s10 = sphi %s659_s10, %s903_s10   ;;  %s614_s9 = sphi %s657_s9, %s902_s9  }
   0x9   : > { %s33_s17 = sadd.s32 1, %s630_s13  ;;  %s42_s18 = sadd.s32 1, %s622_s11 }
   0xa   : > { %p35_p0 = scmp.ge.s32.totalorder %s33_s17, 2  ;;  %p49_p1 = scmp.ne.s32.totalorder %s622_s11, %s618_s10 }
   0xb   : > { %p50_p2 = scmp.eq.s32.totalorder %s634_s14, 0  ;;  %p55_p3 = scmp.ne.s32.totalorder %s618_s10, %s614_s9 }
   0xc   : > { %s908_s17 = smov (%p35_p0, %s33_s17), 0  ;;  %p56_p5 = scmp.eq.s32.totalorder %s388_s15, 0 }
   0xd   : > { %p698_p4 = por %p50_p2, %p49_p1  ;;  %s39_s20 = ssub.s32 %s630_s13, %s908_s17 }
   0xe   : > { %p107_p6 = scmp.eq.s32.totalorder %s388_s15, 1  ;;  %p40_p7 = scmp.eq.s32.totalorder %s39_s20, 0 }
   0xf   : > { %p704_p8 = por %p56_p5, %p55_p3  ;;  %p113_p10 = scmp.eq.s32.totalorder %s389_s16, 1 }
  0x10   : > { %p708_p9 = por %p107_p6, %p49_p1  ;;  %p431_p13 = scmp.lt.s32.totalorder %s634_s14, 2 }
  0x11   : > { %s890_s21 = scalar_select %p704_p8, 1, 0 }
  0x12   : > { %s891_s22 = scalar_select %p708_p9, 1, 0 }
  0x13   : > { %s713_s23 = scalar_select %p40_p7, %s622_s11, %s42_s18  }
  0x14   : > { %p715_p11 = por %p113_p10, %p55_p3  ;;  %s722_s25 = sand.u32 1, %s622_s11  }
  0x15   : > { %s392_s26 = sshll.u32 %s722_s25, 3  ;;  %s393_s27 = sshll.u32 %s630_s13, 7 }
  0x16   : > { %s892_s24 = scalar_select %p715_p11, 1, 0 }
  0x17   : > { %s731_s30 = scalar_lea.hbm %s884_s0, %s393_s27  ;;  %s137_s3 = scalar_lea.vmem [#allocation2], %s392_s26 }
  0x18   : > { %s145_s4 = sshll.u32 %s137_s3, 4  ;;  %p739_p0 = pnand %p431_p13, %p698_p4  ;;  %s735_s4 = int_to_ptr.vmem [resolvable:$true] %s145_s4 }
  0x19   : > { %s134_s6 = scalar_lea.sflag [#allocation3], %s722_s25  ;;  %s488_s7 = scalar_lea.hbm %s731_s30, 128 }
  0x1a   : > { %p489_p3 = scmp.ne.s32.totalorder %s731_s30, %s488_s7  ;;  %p490_p5 = pneg %p739_p0 }
  0x1b   : > { %s493_s16 = scalar_lea.hbm %s884_s0, 256  ;;  %p494_p4 = scmp.lt.u32.totalorder %s731_s30, %s884_s0 }
  0x1c   : > { %p491_p6 = pnand %p490_p5, %p489_p3  ;;  %p495_p10 = scmp.lt.u32.totalorder %s493_s16, %s488_s7 }
  0x1d   : > { %p497_p12 = scmp.lt.u32.totalorder %s488_s7, %s731_s30 }
  0x1e   : > { %p492_p7 = pneg %p491_p6  ;;  %p496_p13 = por %p495_p10, %p494_p4 }
  0x20   : > { %p498_p1 = por %p497_p12, %p496_p13 }
  0x22   : > { %p499_p2 = pnand %p498_p1, %p492_p7 }
  0x24   : > { %502 = shalt.err (!%p499_p2)
}
  0x25   : > { %s503_s20 = scalar_lea.vmem %s735_s4, 128  ;;  %s636_s28 = smov [#allocation2]  }
  0x26   : > { %p504_p3 = scmp.ne.s32.totalorder %s735_s4, %s503_s20  ;;  %s508_s29 = sshll.u32 %s636_s28, 4  ;;  %s509_s29 = int_to_ptr.vmem [resolvable:$false] %s508_s29 }
  0x27   : > { %s510_s3 = scalar_lea.vmem %s509_s29, 256  ;;  %p511_p9 = scmp.lt.s32.totalorder %s735_s4, %s509_s29 }
  0x28   : > { %p506_p6 = pnand %p504_p3, %p490_p5  ;;  %p512_p4 = scmp.lt.s32.totalorder %s510_s3, %s503_s20 }
  0x2a   : > { %p507_p11 = pneg %p506_p6  ;;  %p513_p10 = por %p512_p4, %p511_p9 }
  0x2c   : > { %p514_p12 = pnand %p513_p10, %p507_p11 }
  0x2e   : > { %517 = shalt.err (!%p514_p12)
}
  0x2f   : > { %423 = dma.hbm_to_vmem [thread:$0]  (!%p739_p0), %s731_s30, 128, %s735_s4, %s134_s6  }
  0x30   : > { %p894_p1 = scmp.lt.s32.totalorder %s634_s14, 3  ;;  %p895_p2 = scmp.ge.s32.totalorder %s634_s14, 1 }
  0x31   : > { %s784_s16 = scalar_lea.hbm %s885_s1, %s393_s27  ;;  %s156_s18 = scalar_lea.vmem [#allocation5], %s392_s26 }
  0x32   : > { %p775_p7 = pnand %p895_p2, %p894_p1  ;;  %s164_s19 = sshll.u32 %s156_s18, 4  ;;  %s165_s19 = int_to_ptr.vmem [resolvable:$true] %s164_s19 }
  0x33   : > { %s153_s30 = scalar_lea.sflag [#allocation6], %s722_s25  ;;  %s518_s4 = scalar_lea.hbm %s784_s16, 128 }
  0x34   : > { %s896_s7 = scalar_select %p775_p7, 1, 0 }
  0x35   : > { %p519_p9 = scmp.ne.s32.totalorder %s784_s16, %s518_s4  ;;  %s523_s27 = scalar_lea.hbm %s885_s1, 256 }
  0x36   : > { %p524_p3 = scmp.lt.u32.totalorder %s784_s16, %s885_s1  ;;  %p525_p6 = scmp.lt.u32.totalorder %s523_s27, %s518_s4 }
  0x37   : > { %p521_p11 = pnand %p519_p9, %p490_p5  ;;  %p527_p10 = scmp.lt.u32.totalorder %s518_s4, %s784_s16 }
  0x38   : > { %p526_p4 = por %p525_p6, %p524_p3 }
  0x39   : > { %p522_p13 = pneg %p521_p11 }
  0x3a   : > { %p528_p12 = por %p527_p10, %p526_p4 }
  0x3c   : > { %p529_p1 = pnand %p528_p12, %p522_p13 }
  0x3e   : > { %532 = shalt.err (!%p529_p1)
}
  0x3f   : > { %s533_s25 = scalar_lea.vmem %s165_s19, 128  ;;  %s637_s26 = smov [#allocation5]  }
  0x40   : > { %p534_p2 = scmp.ne.s32.totalorder %s165_s19, %s533_s25  ;;  %s538_s3 = sshll.u32 %s637_s26, 4  ;;  %s539_s3 = int_to_ptr.vmem [resolvable:$false] %s538_s3 }
  0x41   : > { %s540_s8 = scalar_lea.vmem %s539_s3, 256  ;;  %p541_p8 = scmp.lt.s32.totalorder %s165_s19, %s539_s3 }
  0x42   : > { %p536_p9 = pnand %p534_p2, %p490_p5  ;;  %p542_p7 = scmp.lt.s32.totalorder %s540_s8, %s533_s25 }
  0x44   : > { %p537_p11 = pneg %p536_p9  ;;  %p543_p3 = por %p542_p7, %p541_p8 }
  0x46   : > { %p544_p6 = pnand %p543_p3, %p537_p11 }
  0x48   : > { %547 = shalt.err (!%p544_p6)
}
  0x49   : > { %426 = dma.hbm_to_vmem [thread:$0]  (!%p739_p0), %s784_s16, 128, %s165_s19, %s153_s30  }
  0x4a   : > { %p897_p13 = scmp.ne.s32.totalorder %s896_s7, 0 }
  0x4b   : > { %s811_s15 = sand.u32 (!%p897_p13), 1, %s618_s10   ;;  %p898_p5 = scmp.ne.s32.totalorder (!%p897_p13), %s890_s21, 0 }
  0x4c   : > { %173 = sbr.rel (%p897_p13) target bundleno = 126 (0x7e), region = 28  ;;  %s397_s18 = sshll.u32 (!%p897_p13), %s811_s15, 3 }
  0x4d   : > { %s176_s4 = scalar_lea.sflag (!%p897_p13), [#allocation3], %s811_s15  ;;  %s179_s6 = scalar_lea.vmem (!%p897_p13), [#allocation2], %s397_s18 }
  0x53   : > { %601 = dma.done.wait (%p898_p5), %s176_s4, 128  }
  0x54   : > { %603 = vsyncadd (%p898_p5), %s176_s4, 4294967168  ;;  %s185_s5 = scalar_lea.sflag [#allocation6], %s811_s15  ;;  %s188_s16 = scalar_lea.vmem [#allocation5], %s397_s18 }
  0x55   : > { %605 = dma.done.wait (%p898_p5), %s185_s5, 128  }
  0x56   : > { %607 = vsyncadd (%p898_p5), %s185_s5, 4294967168  ;;  %s399_s7 = sshll.u32 %s811_s15, 5  ;;  %v224_v0 = vld [vmem:[%s179_s6] sm:$0xff]  ;;  %v225_v1 = vld [vmem:[%s188_s16] sm:$0xff]  ;;  %v638_v3 = vmov 0.0   ;;  %s413_s21 = sshll.u32 %s626_s12, 9 }
  0x57   : > { %vm226_vm0 = vcmp.eq.f32.partialorder %v225_v1, 1.0  ;;  %v231_v2 = vmax.f32 %v224_v0, 1e-06  ;;  %vm227_vm1 = vcmp.lt.f32.partialorder %v225_v1, 1.0  ;;  %s213_s19 = scalar_lea.vmem [#allocation7], %s399_s7  ;;  %v228_v8 = vsub.f32 1.0, %v225_v1  ;;  %s833_s28 = scalar_lea.hbm %s886_s2, %s413_s21 }
  0x58   : > { %v403_v4 = vsel %vm226_vm0, 1.0, %v638_v3  ;;  %v406_v5 = vsel %vm227_vm1, 1.0, %v638_v3  ;;  %s282_s30 = sshll.u32 %s213_s19, 4  ;;  %s269_s29 = scalar_lea.sflag [#allocation4], %s811_s15  ;;  %s835_s30 = int_to_ptr.vmem [resolvable:$true] %s282_s30 }
  0x59   : > { %v232_v6 = vmin.f32 %v231_v2, 0.999999  ;;  %404 = vst [vmem:[%s213_s19 + $0x10] sm:$0xff] %v403_v4  ;;  %407 = vst [vmem:[%s213_s19 + $0x18] sm:$0xff] %v406_v5  ;;  %v229_v10 = vmul.f32 %v228_v8, %v228_v8  ;;  %s548_s25 = scalar_lea.vmem %s835_s30, 512  ;;  %p899_p0 = scmp.ne.s32.totalorder %s891_s22, 0 }
  0x5a   : > { %p549_p8 = scmp.ne.s32.totalorder %s835_s30, %s548_s25  ;;  %s639_s12 = smov [#allocation7]  }
  0x5b   : > { %484 = vlog2.f32 %v232_v6  ;;  %v235_v7 = vsub.f32 1.0, %v232_v6  ;;  %v241_v13 = vmul.f32 %v232_v6, %v232_v6  ;;  %v230_v16 = vmul.f32 %v229_v10, %v229_v10  ;;  %s552_s26 = sshll.u32 %s639_s12, 4  ;;  %s553_s26 = int_to_ptr.vmem [resolvable:$false] %s552_s26 }
  0x5c   : > { %p550_p7 = pnand %p549_p8, %p899_p0  ;;  %s554_s3 = scalar_lea.vmem %s553_s26, 1024 }
  0x5d   : > { %486 = vlog2.f32 %v235_v7  ;;  %v236_v9 = vmul.f32 %v235_v7, %v235_v7  ;;  %p555_p10 = scmp.lt.s32.totalorder %s835_s30, %s553_s26  ;;  %p556_p12 = scmp.lt.s32.totalorder %s554_s3, %s548_s25 }
  0x5e   : > { %p551_p4 = pneg %p550_p7 }
  0x5f   : > { %p557_p1 = por %p556_p12, %p555_p10 }
  0x61   : > { %p558_p2 = pnand %p557_p1, %p551_p4 }
  0x65   : > { %v485_v11 = vpop.eup %484 }
  0x66   : > { %v234_v12 = vmul.f32 0.6931472, %v485_v11 }
  0x67   : > { %v487_v14 = vpop.eup %486 }
  0x68   : > { %v237_v15 = vmul.f32 %v236_v9, %v234_v12  ;;  %v240_v17 = vmul.f32 0.6931472, %v487_v14 }
  0x6a   : > { %v238_v18 = vsel %vm226_vm0, %v237_v15, 0.0  ;;  %v242_v19 = vmul.f32 %v241_v13, %v240_v17 }
  0x6b   : > { %248 = vst [vmem:[%s213_s19] sm:$0xff] %v238_v18 }
  0x6c   : > { %v243_v20 = vmul.f32 %v242_v19, %v230_v16 }
  0x6e   : > { %v244_v21 = vsel %vm227_vm1, %v243_v20, 0.0 }
  0x6f   : > { %401 = vst [vmem:[%s213_s19 + $0x8] sm:$0xff] %v244_v21 }
  0x70   : > { %561 = shalt.err (!%p558_p2)
}
  0x71   : > { %s562_s8 = scalar_lea.hbm %s833_s28, 512  ;;  %s566_s6 = scalar_lea.hbm %s886_s2, 1024 }
  0x72   : > { %p563_p9 = scmp.ne.s32.totalorder %s833_s28, %s562_s8  ;;  %p567_p6 = scmp.lt.u32.totalorder %s833_s28, %s886_s2 }
  0x73   : > { %p568_p13 = scmp.lt.u32.totalorder %s566_s6, %s562_s8  ;;  %p570_p8 = scmp.lt.u32.totalorder %s562_s8, %s833_s28 }
  0x74   : > { %p564_p11 = pnand %p563_p9, %p899_p0 }
  0x75   : > { %p569_p5 = por %p568_p13, %p567_p6 }
  0x76   : > { %p565_p3 = pneg %p564_p11 }
  0x77   : > { %p571_p7 = por %p570_p8, %p569_p5 }
  0x79   : > { %p572_p4 = pnand %p571_p7, %p565_p3 }
  0x7b   : > { %575 = shalt.err (!%p572_p4)
}
  0x7c   : > { %s640_s7 = smov 128   ;;  %s641_s19 = smov 8  }
  0x7d   : > { %418 = dma.vmem_to_hbm [thread:$0]  (%p899_p0), %s835_s30, 512, %s833_s28, %s269_s29, %s640_s7, %s640_s7, %s641_s19  }
  0x7e PF: > { %s297_s21 = sand.u32 1, %s614_s9   ;;  %p900_p10 = scmp.ne.s32.totalorder %s892_s24, 0 }
  0x7f   : > { %p901_p12 = scmp.ge.s32.totalorder %s634_s14, 2  ;;  %s298_s20 = scalar_lea.sflag [#allocation4], %s297_s21 }
  0x81   : > { %p428_p1 = pnand %p901_p12, %p900_p10 }
  0x83   : > { %609 = dma.done.wait (!%p428_p1), %s298_s20, 512  }
  0x84   : > { %611 = vsyncadd (!%p428_p1), %s298_s20, 4294966784  ;;  %s21_s14 = sadd.s32 1, %s634_s14   ;;  %s902_s9 = smov %s618_s10 }
  0x85   : > { %p18_p2 = scmp.ge.s32.totalorder %s21_s14, 4   ;;  %s903_s10 = smov %s622_s11 }
  0x86   : > { %s904_s11 = smov %s713_s23  ;;  %s905_s12 = smov %s630_s13 }
  0x87   : > { %s906_s13 = smov %s908_s17  ;;  %20 = sbr.rel (!%p18_p2) target bundleno = 8 (0x8), region = 93 }
  0x8e   :  { %303 = vsyncpa [#allocation3], 1 }
  0x8f   :  { %305 = vsyncpa [#allocation3 + $0x1], 1 }
  0x90   :  { %306 = vsyncpa [#allocation6], 1 }
  0x91   :  { %308 = vsyncpa [#allocation6 + $0x1], 1 }
  0x92   :  { %309 = vsyncpa [#allocation4], 1 }
  0x93   :  { %311 = vsyncpa [#allocation4 + $0x1], 1 }

</bundles_post_ra>
